<compile_context>
chip_gen: v5e
topology: v5e:2x2
jax: 0.10.0
libtpu: 0.0.40
codegen_flags: <defaults>
</compile_context>

<pallas_src>
import functools

import jax
import jax.numpy as jnp
from jax import lax
from jax.experimental import pallas as pl
from jax.experimental.pallas import tpu as pltpu

_MIB = 1024 * 1024


def _round_up(x, m):
    return ((x + m - 1) // m) * m


def _gelu_exact(x):
    # PyTorch F.gelu default (approximate='none'): 0.5*x*(1+erf(x/sqrt(2))).
    return 0.5 * x * (1.0 + lax.erf(x * (1.0 / jnp.sqrt(2.0).astype(x.dtype))))


# ----------------------------------------------------------------------------- kernels

def nonlinear_kernel_single(x_ref, w1_ref, b1_ref, w2_ref, b2_ref, o_ref):
    """Whole hidden dim in one step: no accumulator scratch, no RMW."""
    h = jnp.dot(x_ref[...], w1_ref[...], preferred_element_type=jnp.float32)
    h = _gelu_exact(h + b1_ref[...].astype(jnp.float32))
    y = jnp.dot(h.astype(w2_ref.dtype), w2_ref[...],
                preferred_element_type=jnp.float32)
    o_ref[...] = (y + b2_ref[...].astype(jnp.float32)).astype(o_ref.dtype)


def nonlinear_kernel_tiled(x_ref, w1_ref, b1_ref, w2_ref, b2_ref, o_ref, acc_ref):
    """Hidden dim tiled over grid axis 1 ('arbitrary') with an f32 accumulator."""
    k = pl.program_id(1)

    @pl.when(k == 0)
    def _():
        acc_ref[...] = jnp.zeros_like(acc_ref)

    h = jnp.dot(x_ref[...], w1_ref[...], preferred_element_type=jnp.float32)
    h = _gelu_exact(h + b1_ref[...].astype(jnp.float32))
    acc_ref[...] += jnp.dot(h.astype(w2_ref.dtype), w2_ref[...],
                            preferred_element_type=jnp.float32)

    @pl.when(k == pl.num_programs(1) - 1)
    def _():
        o_ref[...] = (acc_ref[...] + b2_ref[...].astype(jnp.float32)).astype(o_ref.dtype)


# ----------------------------------------------------------------------------- tiling helpers

def _vmem_budget_bytes():
    """Physical VMEM capacity minus headroom for compiler-internal scratch."""
    cap = 64 * _MIB  # conservative fallback (v7x per-TensorCore)
    try:
        info = pltpu.get_tpu_info()
        cap_q = int(getattr(info, "vmem_capacity_bytes", cap))
        if cap_q >= 32 * _MIB:
            cap = cap_q
    except Exception:
        pass
    headroom = 16 * _MIB if cap > 96 * _MIB else 12 * _MIB
    return cap - headroom


def _footprint_bytes(tm, th, in_p, out_p, itemsize):
    """Double-buffered pipeline tiles + f32 accumulator/intermediate."""
    in_tiles = tm * in_p + in_p * th + 8 * th + th * out_p + 8 * out_p
    out_tile = tm * out_p
    buffered = 2 * itemsize * (in_tiles + out_tile)
    scratch = 4 * tm * out_p + 4 * tm * th   # f32 acc + f32 hidden activations
    return buffered + scratch


def _choose_tiles(tm_eff, th_req, hid_p, in_p, out_p, itemsize, sub, budget,
                  prefer_single_k):
    """Pick (tm, th) so the double-buffered footprint fits the VMEM budget."""
    # 1) Single K step at full row tile (weights loaded once per row tile).
    if prefer_single_k and _footprint_bytes(tm_eff, hid_p, in_p, out_p, itemsize) <= budget:
        return tm_eff, hid_p

    tiled = sorted({d for d in range(128, hid_p, 128) if hid_p % d == 0},
                   reverse=True)
    th_small = tiled[-1] if tiled else hid_p  # 128 whenever hid_p > 128
    tiled_pref = [d for d in tiled if d <= max(th_req, 128)]

    # 2) Largest hidden tile that fits at the full row tile.
    for th_c in tiled_pref:
        if _footprint_bytes(tm_eff, th_c, in_p, out_p, itemsize) <= budget:
            return tm_eff, th_c

    # 3) Last resort: shrink the row tile with the smallest hidden tile.
    tm_c = tm_eff
    while tm_c > sub and _footprint_bytes(tm_c, th_small, in_p, out_p, itemsize) > budget:
        tm_c = max(sub, _round_up(tm_c // 2, sub))
    if _footprint_bytes(tm_c, th_small, in_p, out_p, itemsize) <= budget:
        return tm_c, th_small

    raise ValueError(
        f"NonLinear tile footprint exceeds the VMEM budget ({budget} B) even at "
        f"tm={sub}, th={th_small}: in_p={in_p}, out_p={out_p}, hid_p={hid_p}.")


# ----------------------------------------------------------------------------- params

def pad_nonlinear_params(w1, b1, w2, b2):
    """Pad weights/biases to lane-dense (multiple-of-128) shapes ONCE, outside
    the per-call path, so the forward pass never re-materialises padded weights
    in HBM. Weights are stored transposed vs nn.Linear: w1 (in, hidden),
    w2 (hidden, out)."""
    in_f, hidden = w1.shape
    out_f = w2.shape[1]
    in_p, hid_p, out_p = (_round_up(d, 128) for d in (in_f, hidden, out_f))
    w1_p = jnp.pad(w1, ((0, in_p - in_f), (0, hid_p - hidden)))
    b1_p = jnp.pad(b1, (0, hid_p - hidden)).reshape(1, hid_p)
    w2_p = jnp.pad(w2, ((0, hid_p - hidden), (0, out_p - out_f)))
    b2_p = jnp.pad(b2, (0, out_p - out_f)).reshape(1, out_p)
    return w1_p, b1_p, w2_p, b2_p


def init_nonlinear_params(key, input_size, output_size, hidden=None,
                          dtype=jnp.float32):
    """Params matching nn.Linear init, stored transposed: (in, out)."""
    if hidden is None:
        hidden = input_size
    k1, k2, k3, k4 = jax.random.split(key, 4)
    bound1 = 1.0 / jnp.sqrt(input_size)
    bound2 = 1.0 / jnp.sqrt(hidden)
    w1 = jax.random.uniform(k1, (input_size, hidden), dtype, -bound1, bound1)
    b1 = jax.random.uniform(k2, (hidden,), dtype, -bound1, bound1)
    w2 = jax.random.uniform(k3, (hidden, output_size), dtype, -bound2, bound2)
    b2 = jax.random.uniform(k4, (output_size,), dtype, -bound2, bound2)
    return w1, b1, w2, b2


# ----------------------------------------------------------------------------- forward

@functools.partial(
    jax.jit, static_argnames=("out_features", "tm", "th", "prefer_single_k"))
def nonlinear_forward_padded(x, w1_pad, b1_pad, w2_pad, b2_pad, *,
                             out_features, tm=512, th=512,
                             prefer_single_k=True):
    """x: (..., in_features) -> (..., out_features). Weights already padded by
    pad_nonlinear_params (lane-dense, multiple of 128)."""
    in_p, hid_p = w1_pad.shape
    out_p = w2_pad.shape[1]
    if in_p % 128 or hid_p % 128 or out_p % 128:
        raise ValueError("padded weight dims must be multiples of 128 "
                         "(use pad_nonlinear_params)")

    lead_shape = x.shape[:-1]
    in_features = x.shape[-1]
    x2d = x.reshape(-1, in_features)
    M = x2d.shape[0]

    itemsize = jnp.dtype(x.dtype).itemsize
    sub = max(8, 32 // itemsize)            # 8 f32 / 16 bf16 / 32 int8,fp8

    # Row tile: as large as requested, dtype-aware sublane multiple, and at
    # least 2 row tiles when M permits (so the parallel axis spans both
    # TensorCores on 2-TC chips).
    tm_eff = min(_round_up(tm, sub), _round_up(M, sub))
    if _round_up(M, tm_eff) // tm_eff < 2 and M > sub:
        tm_eff = _round_up((M + 1) // 2, sub)

    budget = _vmem_budget_bytes()
    tm_eff, th_eff = _choose_tiles(tm_eff, th, hid_p, in_p, out_p, itemsize,
                                   sub, budget, prefer_single_k)

    m_p = _round_up(M, tm_eff)
    grid = (m_p // tm_eff, hid_p // th_eff)
    n_row_tiles = grid[0]
    single_k = grid[1] == 1

    # Per-call activation padding only; zero padding is exact (padded hidden
    # cols give GELU(0)=0 against zero W2 rows, padded out cols are sliced).
    x_pad = jnp.pad(x2d, ((0, m_p - M), (0, in_p - in_features)))

    footprint = _footprint_bytes(tm_eff, th_eff, in_p, out_p, itemsize)
    vmem_limit = int(min(budget, max(int(footprint * 1.2) + 2 * _MIB, 32 * _MIB)))

    cost = pl.CostEstimate(
        flops=2 * m_p * hid_p * (in_p + out_p),
        transcendentals=m_p * hid_p,
        bytes_accessed=itemsize * (m_p * (in_p + out_p)
                                   + n_row_tiles * (in_p * hid_p + hid_p * out_p)),
    )

    kernel = nonlinear_kernel_single if single_k else nonlinear_kernel_tiled
    scratch = [] if single_k else [pltpu.VMEM((tm_eff, out_p), jnp.float32)]

    out = pl.pallas_call(
        kernel,
        out_shape=jax.ShapeDtypeStruct((m_p, out_p), x.dtype),
        grid_spec=pltpu.PrefetchScalarGridSpec(
            num_scalar_prefetch=0,
            grid=grid,
            in_specs=[
                pl.BlockSpec((tm_eff, in_p), lambda i, k: (i, 0)),
                pl.BlockSpec((in_p, th_eff), lambda i, k: (0, k)),
                pl.BlockSpec((1, th_eff), lambda i, k: (0, k)),
                pl.BlockSpec((th_eff, out_p), lambda i, k: (k, 0)),
                pl.BlockSpec((1, out_p), lambda i, k: (0, 0)),
            ],
            out_specs=pl.BlockSpec((tm_eff, out_p), lambda i, k: (i, 0)),
            scratch_shapes=scratch,
        ),
        compiler_params=pltpu.CompilerParams(
            dimension_semantics=("parallel", "arbitrary"),
            vmem_limit_bytes=vmem_limit,
        ),
        cost_estimate=cost,
    )(x_pad, w1_pad, b1_pad, w2_pad, b2_pad)

    return out[:M, :out_features].reshape(*lead_shape, out_features)


def nonlinear_forward(x, w1, b1, w2, b2, *, tm=512, th=512,
                      prefer_single_k=True):
    """One-shot convenience wrapper (pads weights per call). For repeated
    calls, pad once with pad_nonlinear_params and call
    nonlinear_forward_padded so weight padding is not re-materialised in HBM
    on every forward."""
    w1_p, b1_p, w2_p, b2_p = pad_nonlinear_params(w1, b1, w2, b2)
    return nonlinear_forward_padded(
        x, w1_p, b1_p, w2_p, b2_p, out_features=w2.shape[1],
        tm=tm, th=th, prefer_single_k=prefer_single_k)


def reference_forward(x, w1, b1, w2, b2):
    h = jax.nn.gelu(x @ w1 + b1, approximate=False)
    return h @ w2 + b2


if __name__ == "__main__":
    key = jax.random.PRNGKey(0)
    kx, kp, kx2, kp2 = jax.random.split(key, 4)

    # Case 1: small MLP head (single-K fast path) with cached padded weights.
    batch, seq = 2, 8
    input_size, hidden, output_size = 32, 32, 16
    x = jax.random.normal(kx, (batch, seq, input_size), dtype=jnp.float32)
    w1, b1, w2, b2 = init_nonlinear_params(kp, input_size, output_size, hidden)
    padded = pad_nonlinear_params(w1, b1, w2, b2)   # pad ONCE, reuse per call
    y = jax.block_until_ready(
        nonlinear_forward_padded(x, *padded, out_features=output_size))
    y_ref = reference_forward(x, w1, b1, w2, b2)
    assert y.shape == (batch, seq, output_size)
    assert jnp.allclose(y, y_ref, atol=1e-5, rtol=1e-5)

    # Case 2: exercise the K-tiled accumulator path (hidden grid axis > 1),
    # ragged feature dims, and the convenience wrapper.
    x2 = jax.random.normal(kx2, (4, 96, 80), dtype=jnp.float32)
    w1b, b1b, w2b, b2b = init_nonlinear_params(kp2, 80, 96, hidden=320)
    y2 = jax.block_until_ready(
        nonlinear_forward(x2, w1b, b1b, w2b, b2b, th=128, prefer_single_k=False))
    y2_ref = reference_forward(x2, w1b, b1b, w2b, b2b)
    assert y2.shape == (4, 96, 96)
    assert jnp.allclose(y2, y2_ref, atol=2e-5, rtol=1e-5)

    print("KERNEL_OK")
</pallas_src>

<mosaic_0001>
module attributes {stable_mosaic.version = 11 : i64} {
  func.func @nonlinear_kernel_single(%arg0: i32, %arg1: i32, %arg2: memref<8x128xf32, #tpu.memory_space<vmem>>, %arg3: memref<128x128xf32, #tpu.memory_space<vmem>>, %arg4: memref<1x128xf32, #tpu.memory_space<vmem>>, %arg5: memref<128x128xf32, #tpu.memory_space<vmem>>, %arg6: memref<1x128xf32, #tpu.memory_space<vmem>>, %arg7: memref<8x128xf32, #tpu.memory_space<vmem>>) attributes {dimension_semantics = [#tpu.dimension_semantics<parallel>, #tpu.dimension_semantics<arbitrary>], iteration_bounds = array<i64: 2, 1>, scalar_prefetch = 0 : i64, scratch_operands = 0 : i64, tpu.core_type = #tpu.core_type<tc>, window_params = [{transform_indices = @transform_0, window_bounds = array<i64: 8, 128>}, {transform_indices = @transform_1, window_bounds = array<i64: 128, 128>}, {transform_indices = @transform_2, window_bounds = array<i64: 1, 128>}, {transform_indices = @transform_3, window_bounds = array<i64: 128, 128>}, {pipeline_mode = #tpu.pipeline_mode<synchronous>, transform_indices = @transform_4, window_bounds = array<i64: 1, 128>}, {transform_indices = @transform_5, window_bounds = array<i64: 8, 128>}]} {
    %c0 = arith.constant 0 : index
    %c0_0 = arith.constant 0 : index
    %0 = vector.load %arg2[%c0, %c0_0] : memref<8x128xf32, #tpu.memory_space<vmem>>, vector<8x128xf32>
    %c0_1 = arith.constant 0 : index
    %c0_2 = arith.constant 0 : index
    %1 = vector.load %arg3[%c0_1, %c0_2] : memref<128x128xf32, #tpu.memory_space<vmem>>, vector<128x128xf32>
    %cst = arith.constant dense<0.000000e+00> : vector<8x128xf32>
    %2 = tpu.matmul %0, %1, %cst {dimension_numbers = #tpu.dot_dimension_numbers<[1], [0], [0], [1], [0, 0, 1, 1], [], []>} : vector<8x128xf32>, vector<128x128xf32>, vector<8x128xf32> -> vector<8x128xf32>
    %c0_3 = arith.constant 0 : index
    %c0_4 = arith.constant 0 : index
    %3 = vector.load %arg4[%c0_3, %c0_4] : memref<1x128xf32, #tpu.memory_space<vmem>>, vector<1x128xf32>
    %4 = vector.broadcast %3 : vector<1x128xf32> to vector<8x128xf32>
    %5 = arith.addf %2, %4 : vector<8x128xf32>
    %cst_5 = arith.constant 5.000000e-01 : f32
    %6 = vector.broadcast %cst_5 : f32 to vector<8x128xf32>
    %7 = arith.mulf %6, %5 : vector<8x128xf32>
    %cst_6 = arith.constant 2.000000e+00 : f32
    %8 = math.sqrt %cst_6 : f32
    %cst_7 = arith.constant 1.000000e+00 : f32
    %9 = arith.divf %cst_7, %8 : f32
    %10 = vector.broadcast %9 : f32 to vector<8x128xf32>
    %11 = arith.mulf %5, %10 : vector<8x128xf32>
    %12 = math.erf %11 : vector<8x128xf32>
    %cst_8 = arith.constant 1.000000e+00 : f32
    %13 = vector.broadcast %cst_8 : f32 to vector<8x128xf32>
    %14 = arith.addf %13, %12 : vector<8x128xf32>
    %15 = arith.mulf %7, %14 : vector<8x128xf32>
    %c0_9 = arith.constant 0 : index
    %c0_10 = arith.constant 0 : index
    %16 = vector.load %arg5[%c0_9, %c0_10] : memref<128x128xf32, #tpu.memory_space<vmem>>, vector<128x128xf32>
    %cst_11 = arith.constant dense<0.000000e+00> : vector<8x128xf32>
    %17 = tpu.matmul %15, %16, %cst_11 {dimension_numbers = #tpu.dot_dimension_numbers<[1], [0], [0], [1], [0, 0, 1, 1], [], []>} : vector<8x128xf32>, vector<128x128xf32>, vector<8x128xf32> -> vector<8x128xf32>
    %c0_12 = arith.constant 0 : index
    %c0_13 = arith.constant 0 : index
    %18 = vector.load %arg6[%c0_12, %c0_13] : memref<1x128xf32, #tpu.memory_space<vmem>>, vector<1x128xf32>
    %19 = vector.broadcast %18 : vector<1x128xf32> to vector<8x128xf32>
    %20 = arith.addf %17, %19 : vector<8x128xf32>
    %c0_14 = arith.constant 0 : index
    %c0_15 = arith.constant 0 : index
    %21 = vector.load %arg7[%c0_14, %c0_15] : memref<8x128xf32, #tpu.memory_space<vmem>>, vector<8x128xf32>
    tpu.vector_store %arg7[%c0_14, %c0_15], %20 {strides = array<i32>} : memref<8x128xf32, #tpu.memory_space<vmem>>, vector<8x128xf32>,
    return
  }
  func.func @transform_0(%arg0: i32, %arg1: i32) -> (i32, i32) {
    %c0_i32 = arith.constant 0 : i32
    %c0_i32_0 = arith.constant 0 : i32
    return %arg0, %c0_i32 : i32, i32
  }
  func.func @transform_1(%arg0: i32, %arg1: i32) -> (i32, i32) {
    %c0_i32 = arith.constant 0 : i32
    %c0_i32_0 = arith.constant 0 : i32
    return %c0_i32, %arg1 : i32, i32
  }
  func.func @transform_2(%arg0: i32, %arg1: i32) -> (i32, i32) {
    %c0_i32 = arith.constant 0 : i32
    %c0_i32_0 = arith.constant 0 : i32
    return %c0_i32, %arg1 : i32, i32
  }
  func.func @transform_3(%arg0: i32, %arg1: i32) -> (i32, i32) {
    %c0_i32 = arith.constant 0 : i32
    %c0_i32_0 = arith.constant 0 : i32
    return %arg1, %c0_i32 : i32, i32
  }
  func.func @transform_4(%arg0: i32, %arg1: i32) -> (i32, i32) {
    %c0_i32 = arith.constant 0 : i32
    %c0_i32_0 = arith.constant 0 : i32
    %c0_i32_1 = arith.constant 0 : i32
    return %c0_i32, %c0_i32_0 : i32, i32
  }
  func.func @transform_5(%arg0: i32, %arg1: i32) -> (i32, i32) {
    %c0_i32 = arith.constant 0 : i32
    %c0_i32_0 = arith.constant 0 : i32
    return %arg0, %c0_i32 : i32, i32
  }
}

</mosaic_0001>

<bundles_post_ra>
// kernel: nonlinear_forward_padded.1
= control target key start
LH: loop header
LB: loop body
LE: loop exit
PB: predicated region body
PF: predicated region fallthrough
CT: control target
= control target key end

     0   :  { %10 = vsyncpa [#allocation3], 0  ;;  %s793_s0 = inlined_call_operand.vmem [shape: f32[16,128], index: 0, kind: input, shape index: {}]   ;;  %s794_s1 = inlined_call_operand.hbm [shape: f32[128,128], index: 1, kind: input, shape index: {}]   ;;  %s795_s2 = inlined_call_operand.vmem [shape: f32[1,128], index: 2, kind: input, shape index: {}]   ;;  %s796_s3 = inlined_call_operand.hbm [shape: f32[128,128], index: 3, kind: input, shape index: {}]   ;;  %s797_s4 = inlined_call_operand.vmem [shape: f32[1,128], index: 4, kind: input, shape index: {}]   ;;  %s798_s5 = inlined_call_operand.vmem [shape: f32[16,128], index: 5, kind: output, shape index: {}]  }
   0x1   :  { %11 = vsyncpa [#allocation5], 0  ;;  %s714_s18 = smov 0   ;;  %s716_s19 = smov 0  }
   0x2   :  { %s718_s20 = smov 0  }
   0x3 LB: > { %s522_s21 = sadd.s32 4294967295, %s678_s20   ;;  %s29_s22 = sadd.s32 1, %s674_s19  ;;  %s678_s20 = sphi %s718_s20, %s17_s20   ;;  %s674_s19 = sphi %s716_s19, %s802_s19   ;;  %s670_s18 = sphi %s714_s18, %s801_s18  }
   0x4   : > { %p31_p0 = scmp.ge.s32.totalorder %s29_s22, 2  ;;  %p524_p1 = scmp.ge.s32.totalorder %s678_s20, 1 }
   0x5   : > { %p185_p2 = scmp.lt.s32.totalorder %s678_s20, 3  ;;  %p739_p4 = scmp.eq.s32.totalorder %s522_s21, 0 }
   0x6   : > { %s804_s22 = smov (%p31_p0, %s29_s22), 0  ;;  %s198_s27 = sshll.u32 %s794_s1, 4  ;;  %s199_s27 = int_to_ptr.hbm [resolvable:$true] %s198_s27 }
   0x7   : > { %p735_p3 = pnand %p524_p1, %p185_p2  ;;  %s680_s28 = smov [#allocation2]  }
   0x8   : > { %s200_s29 = sshll.u32 %s680_s28, 4  ;;  %s221_s7 = sshll.u32 %s796_s3, 4  ;;  %s201_s29 = int_to_ptr.vmem [resolvable:$true] %s200_s29  ;;  %s222_s7 = int_to_ptr.hbm [resolvable:$true] %s221_s7 }
   0x9   : > { %p545_p5 = pneg %p735_p3  ;;  %s681_s8 = smov 128  }
   0xa   : > { %s682_s9 = smov 8   ;;  %s683_s10 = smov [#allocation4]  }
   0xb   : > { %p546_p6 = pnand %p739_p4, %p545_p5  ;;  %s223_s11 = sshll.u32 %s683_s10, 4  ;;  %s224_s11 = int_to_ptr.vmem [resolvable:$true] %s223_s11 }
   0xc   : > { %249 = sbr.rel (%p735_p3) target bundleno = 360 (0x168), region = 40 }
   0xd   : > { %548 = dma.hbm_to_vmem [thread:$0]  (!%p546_p6), %s199_s27, 2048, %s201_s29, [#allocation3], %s681_s8, %s681_s8, %s682_s9  }
   0xe   : > { %551 = dma.hbm_to_vmem [thread:$0]  (!%p546_p6), %s222_s7, 2048, %s224_s11, [#allocation5], %s681_s8, %s681_s8, %s682_s9  }
  0x11   : > { %661 = dma.done.wait (%p739_p4), [#allocation3], 2048  }
  0x12   : > { %663 = vsyncadd (%p739_p4), [#allocation3], 4294965248 }
  0x13   : > { %665 = dma.done.wait (%p739_p4), [#allocation5], 2048  }
  0x14   : > { %667 = vsyncadd (%p739_p4), [#allocation5], 4294965248  ;;  %v312_v0 = vld [vmem:[#allocation2 + $0x78] sm:$0xff]  ;;  %v311_v1 = vld [vmem:[#allocation2 + $0x70] sm:$0xff]  ;;  %p284_p7 = scmp.lt.s32.totalorder %s670_s18, 1 }
  0x15   : > { %317 = vmatpush.msra.mxu0 %v312_v0  ;;  %v310_v2 = vld [vmem:[#allocation2 + $0x68] sm:$0xff]  ;;  %v309_v3 = vld [vmem:[#allocation2 + $0x60] sm:$0xff]  ;;  %v308_v4 = vld [vmem:[#allocation2 + $0x58] sm:$0xff] }
  0x16   : > { %v307_v5 = vld [vmem:[#allocation2 + $0x50] sm:$0xff]  ;;  %v306_v6 = vld [vmem:[#allocation2 + $0x48] sm:$0xff]  ;;  %v305_v7 = vld [vmem:[#allocation2 + $0x40] sm:$0xff]  ;;  %s806_s18 = smov (!%p284_p7, %s670_s18), 1 }
  0x17   : > { %318 = vmatpush.msra.mxu0 %v311_v1  ;;  %v304_v8 = vld [vmem:[#allocation2 + $0x38] sm:$0xff]  ;;  %v303_v9 = vld [vmem:[#allocation2 + $0x30] sm:$0xff]  ;;  %v302_v10 = vld [vmem:[#allocation2 + $0x28] sm:$0xff]  ;;  %s532_s12 = sshll.u32 %s806_s18, 3 }
  0x18   : > { %v301_v11 = vld [vmem:[#allocation2 + $0x20] sm:$0xff]  ;;  %v300_v12 = vld [vmem:[#allocation2 + $0x18] sm:$0xff]  ;;  %v299_v13 = vld [vmem:[#allocation2 + $0x10] sm:$0xff]  ;;  %s287_s15 = scalar_lea.vmem %s793_s0, %s532_s12  ;;  %s295_s26 = scalar_lea.vmem %s798_s5, %s532_s12 }
  0x19   : > { %319 = vmatpush.msra.mxu0 %v310_v2  ;;  %v298_v14 = vld [vmem:[#allocation2 + $0x8] sm:$0xff]  ;;  %v297_v15 = vld [vmem:[#allocation2] sm:$0xff]  ;;  %v396_v17 = vld [vmem:[#allocation4 + $0x78] sm:$0xff] }
  0x1a   : > { %v296_v16 = vld [vmem:[%s287_s15] sm:$0xff]  ;;  %401 = vmatpush.msra.mxu1 %v396_v17  ;;  %v395_v18 = vld [vmem:[#allocation4 + $0x70] sm:$0xff]  ;;  %v394_v19 = vld [vmem:[#allocation4 + $0x68] sm:$0xff] }
  0x1b   : > { %320 = vmatpush.msra.mxu0 %v309_v3  ;;  %v393_v20 = vld [vmem:[#allocation4 + $0x60] sm:$0xff]  ;;  %v392_v22 = vld [vmem:[#allocation4 + $0x58] sm:$0xff]  ;;  %v391_v23 = vld [vmem:[#allocation4 + $0x50] sm:$0xff] }
  0x1c   : > { %402 = vmatpush.msra.mxu1 %v395_v18  ;;  %v584_v21 = vld [vmem:[%s795_s2] ss:$0 sm:$0xff]  ;;  %v390_v25 = vld [vmem:[#allocation4 + $0x48] sm:$0xff]  ;;  %v388_v29 = vld [vmem:[#allocation4 + $0x38] sm:$0xff] }
  0x1d   : > { %321 = vmatpush.msra.mxu0 %v308_v4  ;;  %v389_v27 = vld [vmem:[#allocation4 + $0x40] sm:$0xff]  ;;  %v387_v31 = vld [vmem:[#allocation4 + $0x30] sm:$0xff]  ;;  %v386_v33 = vld [vmem:[#allocation4 + $0x28] sm:$0xff] }
  0x1e   : > { %403 = vmatpush.msra.mxu1 %v394_v19  ;;  %v385_v36 = vld [vmem:[#allocation4 + $0x20] sm:$0xff]  ;;  %v384_v39 = vld [vmem:[#allocation4 + $0x18] sm:$0xff]  ;;  %v383_v42 = vld [vmem:[#allocation4 + $0x10] sm:$0xff] }
  0x1f   : > { %322 = vmatpush.msra.mxu0 %v307_v5  ;;  %v382_v45 = vld [vmem:[#allocation4 + $0x8] sm:$0xff]  ;;  %v381_v47 = vld [vmem:[#allocation4] sm:$0xff] }
  0x20   : > { %404 = vmatpush.msra.mxu1 %v393_v20 }
  0x21   : > { %323 = vmatpush.msra.mxu0 %v306_v6 }
  0x22   : > { %405 = vmatpush.msra.mxu1 %v392_v22 }
  0x23   : > { %324 = vmatpush.msra.mxu0 %v305_v7 }
  0x24   : > { %406 = vmatpush.msra.mxu1 %v391_v23 }
  0x25   : > { %325 = vmatpush.msra.mxu0 %v304_v8 }
  0x26   : > { %407 = vmatpush.msra.mxu1 %v390_v25 }
  0x27   : > { %326 = vmatpush.msra.mxu0 %v303_v9 }
  0x28   : > { %408 = vmatpush.msra.mxu1 %v389_v27 }
  0x29   : > { %327 = vmatpush.msra.mxu0 %v302_v10 }
  0x2a   : > { %409 = vmatpush.msra.mxu1 %v388_v29 }
  0x2b   : > { %328 = vmatpush.msra.mxu0 %v301_v11  ;;  %v585_v11 = vld [vmem:[%s797_s4] ss:$0 sm:$0xff] }
  0x2c   : > { %410 = vmatpush.msra.mxu1 %v387_v31 }
  0x2d   : > { %329 = vmatpush.msra.mxu0 %v300_v12 }
  0x2e   : > { %411 = vmatpush.msra.mxu1 %v386_v33 }
  0x2f   : > { %330 = vmatpush.msra.mxu0 %v299_v13 }
  0x30   : > { %412 = vmatpush.msra.mxu1 %v385_v36 }
  0x31   : > { %331 = vmatpush.msra.mxu0 %v298_v14 }
  0x32   : > { %413 = vmatpush.msra.mxu1 %v384_v39 }
  0x33   : > { %332 = vmatpush.msra.mxu0 %v297_v15 }
  0x34   : > { %333 = vmatmul.f32.vlgmr.msra.gmra.mxu0 %v296_v16  ;;  %414 = vmatpush.msra.mxu1 %v383_v42 }
  0x36   : > { %415 = vmatpush.msra.mxu1 %v382_v45 }
  0x38   : > { %416 = vmatpush.msra.mxu1 %v381_v47 }
  0xb1   : > { %v334_v24 = vpop.f32.mrf.mxu0 }
  0xb2   : > { %v335_v26 = vadd.f32 %v584_v21, %v334_v24 }
  0xb4   : > { %v338_v28 = vmul.f32 0.70710677, %v335_v26  ;;  %v337_v8 = vmul.f32 0.5, %v335_v26 }
  0xb6   : > { %v339_v30 = vmul.f32 %v338_v28, %v338_v28 }
  0xb8   : > { %v340_v32 = vmin.f32 %v339_v30, 16.0 }
  0xba   : > { %v341_v34 = vmul.f32 2.1237322e-06, %v340_v32  ;;  %v352_v35 = vmul.f32 3.8918573e-05, %v340_v32 }
  0xbc   : > { %v342_v37 = vadd.f32 0.00028619796, %v341_v34  ;;  %v353_v38 = vadd.f32 0.001143296, %v352_v35 }
  0xbe   : > { %v343_v40 = vmul.f32 %v342_v37, %v340_v32  ;;  %v354_v41 = vmul.f32 %v353_v38, %v340_v32 }
  0xc0   : > { %v355_v43 = vadd.f32 0.014752088, %v354_v41  ;;  %v344_v44 = vadd.f32 0.0036580483, %v343_v40 }
  0xc2   : > { %v356_v46 = vmul.f32 %v355_v43, %v340_v32  ;;  %v345_v49 = vmul.f32 %v344_v44, %v340_v32 }
  0xc4   : > { %v357_v48 = vadd.f32 0.112945676, %v356_v46  ;;  %v346_v52 = vadd.f32 0.05243302, %v345_v49 }
  0xc6   : > { %v358_v50 = vmul.f32 %v357_v48, %v340_v32  ;;  %v347_v55 = vmul.f32 %v346_v52, %v340_v32 }
  0xc8   : > { %v359_v51 = vadd.f32 0.4994258, %v358_v50  ;;  %v348_v56 = vadd.f32 0.18741608, %v347_v55 }
  0xca   : > { %v360_v53 = vmul.f32 %v359_v51, %v340_v32  ;;  %v349_v58 = vmul.f32 %v348_v56, %v340_v32 }
  0xcc   : > { %v361_v54 = vadd.f32 1.0, %v360_v53  ;;  %v350_v62 = vadd.f32 1.1283791, %v349_v58 }
  0xce   : > { %586 = vrcp.f32 %v361_v54  ;;  %v373_v61 = vand.u32 2147483648, %v361_v54  ;;  %v371_v0 = vand.u32 2147483647, %v361_v54  ;;  %vm367_vm1 = vweird.f32 %v361_v54 }
  0xcf   : > { %v351_v3 = vmul.f32 %v350_v62, %v338_v28 }
  0xd0   : > { %v374_v2 = vor.u32 1.1754944e-38, %v373_v61  ;;  %vm372_vm3 = vcmp.eq.f32.partialorder %v371_v0, 8.507059e+37 }
  0xd4   : > { %v587_v57 = vpop.eup %586 }
  0xd5   : > { %v363_v59 = vmul.f32 %v587_v57, %v361_v54  ;;  %vm368_vm0 = vweird.f32 %v587_v57 }
  0xd6   : > { %vm369_vm2 = vmor %vm367_vm1, %vm368_vm0 }
  0xd7   : > { %v364_v60 = vsub.f32 1.0, %v363_v59 }
  0xd9   : > { %v365_v63 = vmul.f32 %v587_v57, %v364_v60 }
  0xdb   : > { %v366_v1 = vadd.f32 %v587_v57, %v365_v63 }
  0xdd   : > { %v370_v4 = vsel %vm369_vm2, %v587_v57, %v366_v1 }
  0xde   : > { %v375_v5 = vsel %vm372_vm3, %v374_v2, %v370_v4 }
  0xdf   : > { %v376_v6 = vmul.f32 %v375_v5, %v351_v3 }
  0xe1   : > { %v534_v7 = vclamps-f32 %v376_v6, 1.0 }
  0xe3   : > { %v379_v9 = vadd.f32 1.0, %v534_v7 }
  0xe5   : > { %v380_v10 = vmul.f32 %v379_v9, %v337_v8 }
  0xe7   : > { %417 = vmatmul.f32.vlgmr.msra.gmra.mxu1 %v380_v10 }
 0x164   : > { %v418_v12 = vpop.f32.mrf.mxu1 }
 0x165   : > { %v419_v13 = vadd.f32 %v585_v11, %v418_v12 }
 0x167   : > { %421 = vst [vmem:[%s295_s26] sm:$0xff] %v419_v13 }
 0x168 PF: > { %s17_s20 = sadd.s32 1, %s678_s20   ;;  %s801_s18 = smov %s674_s19 }
 0x169   : > { %p14_p8 = scmp.ge.s32.totalorder %s17_s20, 4   ;;  %s802_s19 = smov %s804_s22 }
 0x16b   :  { %16 = sbr.rel (!%p14_p8) target bundleno = 3 (0x3), region = 84 }
 0x170   :  { %441 = vsyncpa [#allocation3], 1 }
 0x171   :  { %443 = vsyncpa [#allocation3 + $0x1], 1 }
 0x172   :  { %444 = vsyncpa [#allocation5], 1 }

</bundles_post_ra>
